<compile_context>
chip_gen: v6e
topology: v6e:2x2x1
jax: 0.10.0
libtpu: 0.0.40
codegen_flags: <defaults>
</compile_context>

<pallas_src>
import functools

import jax
import jax.numpy as jnp
from jax.experimental import pallas as pl
from jax.experimental.pallas import tpu as pltpu

NEG_SLOPE = 0.01   # torch.nn.LeakyReLU default
LANE = 128         # padded feature width (lane-dense)
HIDDEN = 64
OUT_DIM = 1


def _round_up(n, m):
    return ((n + m - 1) // m) * m


def _cdiv(a, b):
    return (a + b - 1) // b


def _leaky_relu(x):
    # max(x, 0.01*x) == LeakyReLU for 0 < slope < 1; 2 VPU ops instead of 3.
    return jnp.maximum(x, NEG_SLOPE * x)


def _nt_dot(a, b):
    # a: (M, K), b: (N, K) -> (M, N); contracts the last dim of both (the q @ k.T
    # pattern). bf16 operands, f32 accumulation on the MXU.
    return jax.lax.dot_general(
        a, b, (((1,), (1,)), ((), ())), preferred_element_type=jnp.float32)


def mlp_kernel(x_ref, w_ref, b_ref, o_ref, xp_ref):
    # x_ref : (tb, D)        raw input rows (D = true feature count, e.g. 30), f32
    # w_ref : (4, 128, 128)  bf16 weights, PyTorch (out, in) layout, zero padded
    # b_ref : (4, 1, 128)    f32 biases, zero padded
    # o_ref : (1, 1, tb)     sigmoid(logit) for this batch tile, lane-dense
    # xp_ref: (tb, 128)      f32 VMEM scratch used to pad x to 128 lanes
    d = x_ref.shape[1]

    # Zero-pad the feature dim to 128 lanes in VMEM (no wrapper-side pad pass).
    xp_ref[...] = jnp.zeros_like(xp_ref)
    xp_ref[:, :d] = x_ref[...]
    x = xp_ref[...].astype(jnp.bfloat16)

    # Hidden layers: h = leaky_relu(x @ W^T + b). Zero padding keeps padded lanes 0.
    h = _leaky_relu(_nt_dot(x, w_ref[0]) + b_ref[0])
    h = _leaky_relu(_nt_dot(h.astype(jnp.bfloat16), w_ref[1]) + b_ref[1])
    h = _leaky_relu(_nt_dot(h.astype(jnp.bfloat16), w_ref[2]) + b_ref[2])

    # Final layer computed transposed: zT = W4 @ h^T -> (128, tb); only row 0 is
    # real, so the HBM write is a lane-dense (1, tb) row instead of (tb, 128).
    zt = _nt_dot(w_ref[3], h.astype(jnp.bfloat16))            # (128, tb) f32
    row = zt[0:1, :] + b_ref[3][:, 0:1]                       # (1, tb)
    sig = pl.reciprocal(1.0 + jnp.exp(-row), approx=True)     # EUP exp + EUP recip
    o_ref[...] = sig.reshape(o_ref.shape)


def init_params(key, input_dim, hidden=HIDDEN, out_dim=OUT_DIM):
    """nn.Linear-style init (uniform +/- 1/sqrt(fan_in)); PyTorch (out, in) layout."""
    dims = [(hidden, input_dim), (hidden, hidden), (hidden, hidden), (out_dim, hidden)]
    params = []
    for fan_out, fan_in in dims:
        key, kw, kb = jax.random.split(key, 3)
        bound = 1.0 / jnp.sqrt(fan_in)
        w = jax.random.uniform(kw, (fan_out, fan_in), jnp.float32, -bound, bound)
        b = jax.random.uniform(kb, (fan_out,), jnp.float32, -bound, bound)
        params.extend([w, b])
    return tuple(params)


def pack_params(params, d_pad=LANE):
    """Zero-pad each layer to (d_pad, d_pad)/(1, d_pad) and stack into two slabs.

    Weights are cast to bf16 (MXU operands, half the weight DMA); biases stay f32.
    Zero padding keeps the real output exact: padded x lanes hit zero weight
    columns, padded hidden lanes get bias 0 -> leaky_relu(0) = 0 -> stay zero.
    """
    ws, bs = [], []
    for i in range(0, len(params), 2):
        w, b = params[i], params[i + 1]
        wp = jnp.zeros((d_pad, d_pad), jnp.float32).at[: w.shape[0], : w.shape[1]].set(w)
        bp = jnp.zeros((1, d_pad), jnp.float32).at[0, : b.shape[0]].set(b)
        ws.append(wp.astype(jnp.bfloat16))
        bs.append(bp)
    return jnp.stack(ws), jnp.stack(bs)   # (4, d_pad, d_pad) bf16, (4, 1, d_pad) f32


def _choose_tiles(batch, tile_b):
    """Adaptive batch tiling: padding waste < 8 rows/tile; >=2 steps for v7x."""
    n = max(1, _cdiv(batch, tile_b))
    if n == 1 and batch >= 256:
        n = 2                        # give v7x's second TensorCore a grid step
    if n == 1:
        return 1, batch              # block == full batch dim (always legal)
    tb = _round_up(_cdiv(batch, n), 8)
    return _cdiv(batch, tb), tb


@functools.partial(jax.jit, static_argnames=("tile_b",))
def mlp_forward(x, w_slab, b_slab, tile_b=1024):
    B, D = x.shape
    n_layers, d_pad, _ = w_slab.shape
    assert D <= d_pad, "input_dim > 128 not supported by this kernel"

    n_tiles, tb = _choose_tiles(B, tile_b)

    out = pl.pallas_call(
        mlp_kernel,
        out_shape=jax.ShapeDtypeStruct((n_tiles, 1, tb), jnp.float32),
        grid=(n_tiles,),
        in_specs=[
            pl.BlockSpec((tb, D), lambda i: (i, 0)),                       # x tile (pipelined)
            pl.BlockSpec((n_layers, d_pad, d_pad), lambda i: (0, 0, 0)),   # weights resident
            pl.BlockSpec((n_layers, 1, d_pad), lambda i: (0, 0, 0)),       # biases resident
        ],
        out_specs=pl.BlockSpec((1, 1, tb), lambda i: (i, 0, 0)),
        scratch_shapes=[pltpu.VMEM((tb, d_pad), jnp.float32)],
        compiler_params=pltpu.CompilerParams(
            dimension_semantics=("parallel",)),
    )(x, w_slab, b_slab)

    # (n_tiles, 1, tb) -> (B, 1): drop the (tiny) batch-tile padding.
    return out.reshape(n_tiles * tb)[:B].reshape(B, 1)


if __name__ == "__main__":
    key = jax.random.PRNGKey(0)
    key, kx = jax.random.split(key)

    B, INPUT_DIM = 8, 30   # e.g. breast-cancer feature vectors
    x = jax.random.normal(kx, (B, INPUT_DIM), jnp.float32)

    params = init_params(key, INPUT_DIM)
    w_slab, b_slab = pack_params(params)

    out = mlp_forward(x, w_slab, b_slab)
    out = jax.block_until_ready(out)

    # Pure-JAX f32 reference on the unpadded PyTorch-layout params.
    def ref(x, p):
        w1, b1, w2, b2, w3, b3, w4, b4 = p
        h = _leaky_relu(x @ w1.T + b1)
        h = _leaky_relu(h @ w2.T + b2)
        h = _leaky_relu(h @ w3.T + b3)
        return jax.nn.sigmoid(h @ w4.T + b4)

    expected = ref(x, params)
    assert out.shape == (B, 1)
    # bf16 matmul operands + approx reciprocal in the sigmoid -> loosened tolerance.
    assert jnp.allclose(out, expected, atol=2e-2), "mismatch vs reference"
    print("KERNEL_OK")
</pallas_src>

<mosaic_0001>
module attributes {stable_mosaic.version = 11 : i64} {
  func.func @mlp_kernel(%arg0: i32, %arg1: memref<8x30xf32, #tpu.memory_space<vmem>>, %arg2: memref<4x128x128xbf16, #tpu.memory_space<vmem>>, %arg3: memref<4x1x128xf32, #tpu.memory_space<vmem>>, %arg4: memref<1x1x8xf32, #tpu.memory_space<vmem>>, %arg5: memref<8x128xf32, #tpu.memory_space<vmem>>) attributes {dimension_semantics = [#tpu.dimension_semantics<parallel>], iteration_bounds = array<i64: 1>, scalar_prefetch = 0 : i64, scratch_operands = 1 : i64, tpu.core_type = #tpu.core_type<tc>, window_params = [{transform_indices = @transform_0, window_bounds = array<i64: 8, 30>}, {pipeline_mode = #tpu.pipeline_mode<synchronous>, transform_indices = @transform_1, window_bounds = array<i64: 4, 128, 128>}, {pipeline_mode = #tpu.pipeline_mode<synchronous>, transform_indices = @transform_2, window_bounds = array<i64: 4, 1, 128>}, {transform_indices = @transform_3, window_bounds = array<i64: 1, 1, 8>}]} {
    %cst = arith.constant 0.000000e+00 : f32
    %0 = vector.broadcast %cst : f32 to vector<8x128xf32>
    %c0 = arith.constant 0 : index
    %c0_0 = arith.constant 0 : index
    %1 = vector.load %arg5[%c0, %c0_0] : memref<8x128xf32, #tpu.memory_space<vmem>>, vector<8x128xf32>
    tpu.vector_store %arg5[%c0, %c0_0], %0 {strides = array<i32>} : memref<8x128xf32, #tpu.memory_space<vmem>>, vector<8x128xf32>,
    %c0_1 = arith.constant 0 : index
    %c0_2 = arith.constant 0 : index
    %2 = vector.load %arg1[%c0_1, %c0_2] : memref<8x30xf32, #tpu.memory_space<vmem>>, vector<8x30xf32>
    %c0_3 = arith.constant 0 : index
    %c0_4 = arith.constant 0 : index
    %3 = vector.load %arg5[%c0_3, %c0_4] : memref<8x128xf32, #tpu.memory_space<vmem>>, vector<8x30xf32>
    tpu.vector_store %arg5[%c0_3, %c0_4], %2 {strides = array<i32>} : memref<8x128xf32, #tpu.memory_space<vmem>>, vector<8x30xf32>,
    %c0_5 = arith.constant 0 : index
    %c0_6 = arith.constant 0 : index
    %4 = vector.load %arg5[%c0_5, %c0_6] : memref<8x128xf32, #tpu.memory_space<vmem>>, vector<8x128xf32>
    %5 = arith.truncf %4 : vector<8x128xf32> to vector<8x128xbf16>
    %c0_7 = arith.constant 0 : index
    %c0_8 = arith.constant 0 : index
    %c0_9 = arith.constant 0 : index
    %6 = vector.load %arg2[%c0_7, %c0_8, %c0_9] : memref<4x128x128xbf16, #tpu.memory_space<vmem>>, vector<1x128x128xbf16>
    %7 = vector.shape_cast %6 : vector<1x128x128xbf16> to vector<128x128xbf16>
    %cst_10 = arith.constant dense<0.000000e+00> : vector<8x128xf32>
    %8 = tpu.matmul %5, %7, %cst_10 {dimension_numbers = #tpu.dot_dimension_numbers<[1], [1], [0], [0], [0, 0, 1, 0], [], []>} : vector<8x128xbf16>, vector<128x128xbf16>, vector<8x128xf32> -> vector<8x128xf32>
    %c0_11 = arith.constant 0 : index
    %c0_12 = arith.constant 0 : index
    %c0_13 = arith.constant 0 : index
    %9 = vector.load %arg3[%c0_11, %c0_12, %c0_13] : memref<4x1x128xf32, #tpu.memory_space<vmem>>, vector<1x1x128xf32>
    %10 = vector.shape_cast %9 : vector<1x1x128xf32> to vector<1x128xf32>
    %11 = vector.broadcast %10 : vector<1x128xf32> to vector<8x128xf32>
    %12 = arith.addf %8, %11 : vector<8x128xf32>
    %cst_14 = arith.constant 0.00999999977 : f32
    %13 = vector.broadcast %cst_14 : f32 to vector<8x128xf32>
    %14 = arith.mulf %13, %12 : vector<8x128xf32>
    %15 = arith.maximumf %12, %14 : vector<8x128xf32>
    %16 = arith.truncf %15 : vector<8x128xf32> to vector<8x128xbf16>
    %c1 = arith.constant 1 : index
    %c0_15 = arith.constant 0 : index
    %c0_16 = arith.constant 0 : index
    %17 = vector.load %arg2[%c1, %c0_15, %c0_16] : memref<4x128x128xbf16, #tpu.memory_space<vmem>>, vector<1x128x128xbf16>
    %18 = vector.shape_cast %17 : vector<1x128x128xbf16> to vector<128x128xbf16>
    %cst_17 = arith.constant dense<0.000000e+00> : vector<8x128xf32>
    %19 = tpu.matmul %16, %18, %cst_17 {dimension_numbers = #tpu.dot_dimension_numbers<[1], [1], [0], [0], [0, 0, 1, 0], [], []>} : vector<8x128xbf16>, vector<128x128xbf16>, vector<8x128xf32> -> vector<8x128xf32>
    %c1_18 = arith.constant 1 : index
    %c0_19 = arith.constant 0 : index
    %c0_20 = arith.constant 0 : index
    %20 = vector.load %arg3[%c1_18, %c0_19, %c0_20] : memref<4x1x128xf32, #tpu.memory_space<vmem>>, vector<1x1x128xf32>
    %21 = vector.shape_cast %20 : vector<1x1x128xf32> to vector<1x128xf32>
    %22 = vector.broadcast %21 : vector<1x128xf32> to vector<8x128xf32>
    %23 = arith.addf %19, %22 : vector<8x128xf32>
    %cst_21 = arith.constant 0.00999999977 : f32
    %24 = vector.broadcast %cst_21 : f32 to vector<8x128xf32>
    %25 = arith.mulf %24, %23 : vector<8x128xf32>
    %26 = arith.maximumf %23, %25 : vector<8x128xf32>
    %27 = arith.truncf %26 : vector<8x128xf32> to vector<8x128xbf16>
    %c2 = arith.constant 2 : index
    %c0_22 = arith.constant 0 : index
    %c0_23 = arith.constant 0 : index
    %28 = vector.load %arg2[%c2, %c0_22, %c0_23] : memref<4x128x128xbf16, #tpu.memory_space<vmem>>, vector<1x128x128xbf16>
    %29 = vector.shape_cast %28 : vector<1x128x128xbf16> to vector<128x128xbf16>
    %cst_24 = arith.constant dense<0.000000e+00> : vector<8x128xf32>
    %30 = tpu.matmul %27, %29, %cst_24 {dimension_numbers = #tpu.dot_dimension_numbers<[1], [1], [0], [0], [0, 0, 1, 0], [], []>} : vector<8x128xbf16>, vector<128x128xbf16>, vector<8x128xf32> -> vector<8x128xf32>
    %c2_25 = arith.constant 2 : index
    %c0_26 = arith.constant 0 : index
    %c0_27 = arith.constant 0 : index
    %31 = vector.load %arg3[%c2_25, %c0_26, %c0_27] : memref<4x1x128xf32, #tpu.memory_space<vmem>>, vector<1x1x128xf32>
    %32 = vector.shape_cast %31 : vector<1x1x128xf32> to vector<1x128xf32>
    %33 = vector.broadcast %32 : vector<1x128xf32> to vector<8x128xf32>
    %34 = arith.addf %30, %33 : vector<8x128xf32>
    %cst_28 = arith.constant 0.00999999977 : f32
    %35 = vector.broadcast %cst_28 : f32 to vector<8x128xf32>
    %36 = arith.mulf %35, %34 : vector<8x128xf32>
    %37 = arith.maximumf %34, %36 : vector<8x128xf32>
    %c3 = arith.constant 3 : index
    %c0_29 = arith.constant 0 : index
    %c0_30 = arith.constant 0 : index
    %38 = vector.load %arg2[%c3, %c0_29, %c0_30] : memref<4x128x128xbf16, #tpu.memory_space<vmem>>, vector<1x128x128xbf16>
    %39 = vector.shape_cast %38 : vector<1x128x128xbf16> to vector<128x128xbf16>
    %40 = arith.truncf %37 : vector<8x128xf32> to vector<8x128xbf16>
    %cst_31 = arith.constant dense<0.000000e+00> : vector<128x8xf32>
    %41 = tpu.matmul %39, %40, %cst_31 {dimension_numbers = #tpu.dot_dimension_numbers<[1], [1], [0], [0], [0, 0, 1, 0], [], []>} : vector<128x128xbf16>, vector<8x128xbf16>, vector<128x8xf32> -> vector<128x8xf32>
    %42 = vector.extract_strided_slice %41 {offsets = [0, 0], sizes = [1, 8], strides = [1, 1]} : vector<128x8xf32> to vector<1x8xf32>
    %c3_32 = arith.constant 3 : index
    %c0_33 = arith.constant 0 : index
    %c0_34 = arith.constant 0 : index
    %43 = vector.load %arg3[%c3_32, %c0_33, %c0_34] : memref<4x1x128xf32, #tpu.memory_space<vmem>>, vector<1x1x128xf32>
    %44 = vector.shape_cast %43 : vector<1x1x128xf32> to vector<1x128xf32>
    %45 = vector.extract_strided_slice %44 {offsets = [0, 0], sizes = [1, 1], strides = [1, 1]} : vector<1x128xf32> to vector<1x1xf32>
    %46 = vector.broadcast %45 : vector<1x1xf32> to vector<1x8xf32>
    %47 = arith.addf %42, %46 : vector<1x8xf32>
    %cst_35 = arith.constant 0.000000e+00 : f32
    %48 = vector.broadcast %cst_35 : f32 to vector<1x8xf32>
    %49 = arith.subf %48, %47 : vector<1x8xf32>
    %50 = math.exp %49 : vector<1x8xf32>
    %cst_36 = arith.constant 1.000000e+00 : f32
    %51 = vector.broadcast %cst_36 : f32 to vector<1x8xf32>
    %52 = arith.addf %51, %50 : vector<1x8xf32>
    %53 = tpu.reciprocal %52 {approx = true} : vector<1x8xf32> -> vector<1x8xf32>
    %54 = vector.shape_cast %53 : vector<1x8xf32> to vector<1x1x8xf32>
    %c0_37 = arith.constant 0 : index
    %c0_38 = arith.constant 0 : index
    %c0_39 = arith.constant 0 : index
    %55 = vector.load %arg4[%c0_37, %c0_38, %c0_39] : memref<1x1x8xf32, #tpu.memory_space<vmem>>, vector<1x1x8xf32>
    tpu.vector_store %arg4[%c0_37, %c0_38, %c0_39], %54 {strides = array<i32>} : memref<1x1x8xf32, #tpu.memory_space<vmem>>, vector<1x1x8xf32>,
    return
  }
  func.func @transform_0(%arg0: i32) -> (i32, i32) {
    %c0_i32 = arith.constant 0 : i32
    %c0_i32_0 = arith.constant 0 : i32
    return %arg0, %c0_i32 : i32, i32
  }
  func.func @transform_1(%arg0: i32) -> (i32, i32, i32) {
    %c0_i32 = arith.constant 0 : i32
    %c0_i32_0 = arith.constant 0 : i32
    %c0_i32_1 = arith.constant 0 : i32
    %c0_i32_2 = arith.constant 0 : i32
    return %c0_i32, %c0_i32_0, %c0_i32_1 : i32, i32, i32
  }
  func.func @transform_2(%arg0: i32) -> (i32, i32, i32) {
    %c0_i32 = arith.constant 0 : i32
    %c0_i32_0 = arith.constant 0 : i32
    %c0_i32_1 = arith.constant 0 : i32
    %c0_i32_2 = arith.constant 0 : i32
    return %c0_i32, %c0_i32_0, %c0_i32_1 : i32, i32, i32
  }
  func.func @transform_3(%arg0: i32) -> (i32, i32, i32) {
    %c0_i32 = arith.constant 0 : i32
    %c0_i32_0 = arith.constant 0 : i32
    %c0_i32_1 = arith.constant 0 : i32
    return %arg0, %c0_i32, %c0_i32_0 : i32, i32, i32
  }
}

</mosaic_0001>

<bundles_post_ra>
// kernel: mlp_forward.1
= control target key start
LH: loop header
LB: loop body
LE: loop exit
PB: predicated region body
PF: predicated region fallthrough
CT: control target
= control target key end

     0   :  { %8 = vsyncpa [#allocation4], 0  ;;  %s946_s0 = inlined_call_operand.hbm [shape: f32[8,30], index: 0, kind: input, shape index: {}]   ;;  %s947_s1 = inlined_call_operand.hbm [shape: bf16[4,128,128], index: 1, kind: input, shape index: {}]   ;;  %s948_s2 = inlined_call_operand.hbm [shape: f32[4,1,128], index: 2, kind: input, shape index: {}]   ;;  %s949_s3 = inlined_call_operand.hbm [shape: f32[1,1,8], index: 3, kind: output, shape index: {}]  }
   0x1   :  { %9 = vsyncpa [#allocation7], 0 }
   0x2   :  { %10 = vsyncpa [#allocation5], 0  ;;  %s872_s12 = smov [#allocation6]  }
   0x3   :  { %s26_s13 = sshll.u32 %s872_s12, 4  ;;  %s27_s13 = int_to_ptr.vmem [resolvable:$true] %s26_s13 }
   0x4   :  { %s794_s14 = scalar_lea.vmem %s27_s13, 4096  ;;  %p799_p1 = scmp.lt.s32.totalorder %s27_s13, %s27_s13 }
   0x5   :  { %p795_p0 = scmp.ne.s32.totalorder %s27_s13, %s794_s14  ;;  %p800_p2 = scmp.lt.s32.totalorder %s794_s14, %s794_s14 }
   0x7   :  { %p801_p3 = por %p800_p2, %p799_p1 }
   0x9   :  { %p802_p4 = pnand %p801_p3, %p795_p0 }
   0xb   :  { %805 = shalt.err (!%p802_p4)
}
   0xc   :  { %s873_s15 = smov 64   ;;  %s874_s16 = smov 4  }
   0xd   :  { %32 = dma.hbm_to_vmem [thread:$0]  %s947_s1, 4096, %s27_s13, [#allocation7], %s873_s15, %s873_s15, %s874_s16  }
   0xe   :  { %s875_s19 = smov [#allocation3]   ;;  %s876_s21 = smov [#allocation8]  }
   0xf   :  { %s17_s20 = sshll.u32 %s875_s19, 4  ;;  %s38_s22 = sshll.u32 %s876_s21, 4  ;;  %s18_s20 = int_to_ptr.vmem [resolvable:$true] %s17_s20  ;;  %s39_s22 = int_to_ptr.vmem [resolvable:$true] %s38_s22 }
  0x10   :  { %s814_s23 = scalar_lea.vmem %s18_s20, 128  ;;  %p819_p6 = scmp.lt.s32.totalorder %s18_s20, %s18_s20 }
  0x11   :  { %p815_p5 = scmp.ne.s32.totalorder %s18_s20, %s814_s23  ;;  %p820_p7 = scmp.lt.s32.totalorder %s814_s23, %s814_s23 }
  0x13   :  { %p821_p8 = por %p820_p7, %p819_p6 }
  0x15   :  { %p822_p9 = pnand %p821_p8, %p815_p5 }
  0x17   :  { %825 = shalt.err (!%p822_p9)
}
  0x18   :  { %20 = dma.hbm_to_vmem [thread:$0]  %s946_s0, 128, %s18_s20, [#allocation4]  }
  0x19   :  { %s834_s26 = scalar_lea.vmem %s39_s22, 64  ;;  %p839_p11 = scmp.lt.s32.totalorder %s39_s22, %s39_s22 }
  0x1a   :  { %p835_p10 = scmp.ne.s32.totalorder %s39_s22, %s834_s26  ;;  %p840_p12 = scmp.lt.s32.totalorder %s834_s26, %s834_s26 }
  0x1c   :  { %p841_p13 = por %p840_p12, %p839_p11 }
  0x1e   :  { %p842_p0 = pnand %p841_p13, %p835_p10 }
  0x20   :  { %845 = shalt.err (!%p842_p0)
}
  0x21   :  { %s877_s1 = smov 16   ;;  %s878_s27 = smov 1  }
  0x22   :  { %44 = dma.hbm_to_vmem [thread:$0]  %s948_s2, 64, %s39_s22, [#allocation7], %s877_s1, %s877_s1, %s878_s27  }
  0x23   :  { %866 = dma.done.wait [#allocation4], 128  }
  0x24   :  { %867 = vsyncadd [#allocation4], 4294967168 }
  0x25   :  { %868 = dma.done.wait [#allocation7], 4160  }
  0x26   :  { %869 = vsyncadd [#allocation7], 4294963136  ;;  %v879_v0 = vmov 0.0   ;;  %vm880_vm0 = vmmov 0   ;;  %v750_v1 = vld [vmem:[#allocation6 + $0x38] sm:$0xff]   ;;  %v751_v2 = vld [vmem:[#allocation6 + $0x30] sm:$0xff]  }
  0x27   :  { %660 = vmatprep.subr.bf16.mxu0 %v879_v0  ;;  %55 = vst [vmem:[#allocation2] sm:$0xff] %v879_v0  ;;  %676 = vmatprep.mubr.msk.bf16.mxu0 %vm880_vm0, %v879_v0  ;;  %vm57_vm1 = vcmask 244736   ;;  %v56_v3 = vld [vmem:[#allocation3] sm:$0xff]  ;;  %v752_v5 = vld [vmem:[#allocation6 + $0x28] sm:$0xff]   ;;  %v759_v6 = vld [vmem:[#allocation6 + $0x70] sm:$0xff]   ;;  %v881_v48 = vmov 0  }
  0x28   :  { %680 = vmatprep.subr.bf16.mxu1 %v879_v0  ;;  %696 = vmatprep.mubr.msk.bf16.mxu1 %vm880_vm0, %v879_v0  ;;  %58 = vst.msk [vmem:[#allocation2] sm:$0xff] %vm57_vm1, %v56_v3  ;;  %v758_v4 = vld [vmem:[#allocation6 + $0x78] sm:$0xff]   ;;  %v753_v7 = vld [vmem:[#allocation6 + $0x20] sm:$0xff]   ;;  %v760_v8 = vld [vmem:[#allocation6 + $0x68] sm:$0xff]   ;;  %s882_s0 = smov [#allocation9]   ;;  %vm571_vm2 = vcmask 57344  }
  0x29   :  { %661 = vmatpush3.bf16.xpose.msra.mxu0 %v750_v1  ;;  %681 = vmatpush3.bf16.xpose.msra.mxu1 %v758_v4  ;;  %v754_v9 = vld [vmem:[#allocation6 + $0x18] sm:$0xff]   ;;  %v761_v10 = vld [vmem:[#allocation6 + $0x60] sm:$0xff]   ;;  %v755_v11 = vld [vmem:[#allocation6 + $0x10] sm:$0xff]   ;;  %v561_v1 = vlaneseq  ;;  %s579_s2 = sshll.u32 %s882_s0, 4  ;;  %s580_s2 = int_to_ptr.vmem [resolvable:$true] %s579_s2 }
  0x2a   :  { %662 = vmatprep.subr.bf16.mxu0 %v879_v0  ;;  %682 = vmatprep.subr.bf16.mxu1 %v879_v0  ;;  %v762_v12 = vld [vmem:[#allocation6 + $0x58] sm:$0xff]   ;;  %v756_v13 = vld [vmem:[#allocation6 + $0x8] sm:$0xff]   ;;  %v763_v14 = vld [vmem:[#allocation6 + $0x50] sm:$0xff]   ;;  %s846_s30 = scalar_lea.vmem %s580_s2, 16  ;;  %s850_s4 = scalar_lea.vmem %s580_s2, 32 }
  0x2b   :  { %v757_v15 = vld [vmem:[#allocation6] sm:$0xff]   ;;  %v764_v16 = vld [vmem:[#allocation6 + $0x48] sm:$0xff]   ;;  %v766_v20 = vld [vmem:[#allocation6 + $0xb8] sm:$0xff]   ;;  %749 = vset.pattern.permute.xlu0 %v881_v48  ;;  %p847_p1 = scmp.ne.s32.totalorder %s580_s2, %s846_s30  ;;  %p851_p2 = scmp.lt.s32.totalorder %s580_s2, %s580_s2 }
  0x2c   :  { %v765_v19 = vld [vmem:[#allocation6 + $0x40] sm:$0xff]   ;;  %v767_v21 = vld [vmem:[#allocation6 + $0xb0] sm:$0xff]   ;;  %v768_v22 = vld [vmem:[#allocation6 + $0xa8] sm:$0xff]   ;;  %p852_p3 = scmp.lt.s32.totalorder %s850_s4, %s846_s30 }
  0x2d   :  { %v769_v23 = vld [vmem:[#allocation6 + $0xa0] sm:$0xff]   ;;  %v770_v24 = vld [vmem:[#allocation6 + $0x98] sm:$0xff]   ;;  %v771_v25 = vld [vmem:[#allocation6 + $0x90] sm:$0xff]  }
  0x2e   :  { %v772_v26 = vld [vmem:[#allocation6 + $0x88] sm:$0xff]   ;;  %v589_v27 = vld [vmem:[#allocation8] ss:$0 sm:$0xff]  ;;  %v598_v37 = vld [vmem:[#allocation8 + $0x1] ss:$0 sm:$0xff]  ;;  %p853_p4 = por %p852_p3, %p851_p2 }
  0x2f   :  { %v59_v17 = vld [vmem:[#allocation2] sm:$0xff]  ;;  %v773_v36 = vld [vmem:[#allocation6 + $0x80] sm:$0xff]   ;;  %v775_v58 = vld [vmem:[#allocation6 + $0xc8] sm:$0xff]  }
  0x30   :  { %v60_v18 = vpack.c.bf16 %v59_v17, %v59_v17  ;;  %v774_v46 = vld [vmem:[#allocation6 + $0xc0] sm:$0xff]   ;;  %v776_v59 = vld [vmem:[#allocation6 + $0xd0] sm:$0xff]   ;;  %v777_v60 = vld [vmem:[#allocation6 + $0xd8] sm:$0xff]   ;;  %p854_p5 = pnand %p853_p4, %p847_p1 }
  0x31   :  { %663 = vmatpush3.bf16.xpose.msra.mxu0 %v751_v2  ;;  %683 = vmatpush3.bf16.xpose.msra.mxu1 %v759_v6  ;;  %v555_v47 = vld [vmem:[#allocation8 + $0x3] sm:$0x1]  ;;  %v607_v49 = vld [vmem:[#allocation8 + $0x2] ss:$0 sm:$0xff]  ;;  %v779_v62 = vld [vmem:[#allocation6 + $0xe8] sm:$0xff]   ;;  %v562_v2 = vshrl.u32 %v561_v1, 7 }
  0x32   :  { %664 = vmatprep.subr.bf16.mxu0 %v879_v0  ;;  %684 = vmatprep.subr.bf16.mxu1 %v879_v0  ;;  %v778_v61 = vld [vmem:[#allocation6 + $0xe0] sm:$0xff]   ;;  %v780_v63 = vld [vmem:[#allocation6 + $0xf0] sm:$0xff]  }
  0x33   :  { %558 = vperm.xlu0 %749, %v555_v47   ;;  %v563_v3 = vsub.s32 0, %v562_v2 }
  0x39   :  { %665 = vmatpush3.bf16.xpose.msra.mxu0 %v752_v5  ;;  %685 = vmatpush3.bf16.xpose.msra.mxu1 %v760_v8 }
  0x3a   :  { %666 = vmatprep.subr.bf16.mxu0 %v879_v0  ;;  %686 = vmatprep.subr.bf16.mxu1 %v879_v0 }
  0x41   :  { %667 = vmatpush3.bf16.xpose.msra.mxu0 %v753_v7  ;;  %687 = vmatpush3.bf16.xpose.msra.mxu1 %v761_v10 }
  0x42   :  { %668 = vmatprep.subr.bf16.mxu0 %v879_v0  ;;  %688 = vmatprep.subr.bf16.mxu1 %v879_v0 }
  0x49   :  { %669 = vmatpush3.bf16.xpose.msra.mxu0 %v754_v9  ;;  %689 = vmatpush3.bf16.xpose.msra.mxu1 %v762_v12 }
  0x4a   :  { %670 = vmatprep.subr.bf16.mxu0 %v879_v0  ;;  %690 = vmatprep.subr.bf16.mxu1 %v879_v0 }
  0x51   :  { %671 = vmatpush3.bf16.xpose.msra.mxu0 %v755_v11  ;;  %691 = vmatpush3.bf16.xpose.msra.mxu1 %v763_v14 }
  0x52   :  { %672 = vmatprep.subr.bf16.mxu0 %v879_v0  ;;  %692 = vmatprep.subr.bf16.mxu1 %v879_v0 }
  0x59   :  { %673 = vmatpush3.bf16.xpose.msra.mxu0 %v756_v13  ;;  %693 = vmatpush3.bf16.xpose.msra.mxu1 %v764_v16 }
  0x5a   :  { %674 = vmatprep.subr.bf16.mxu0 %v879_v0  ;;  %694 = vmatprep.subr.bf16.mxu1 %v879_v0 }
  0x61   :  { %675 = vmatpush3.bf16.xpose.msra.mxu0 %v757_v15  ;;  %695 = vmatpush3.bf16.xpose.msra.mxu1 %v765_v19 }
  0x62   :  { %700 = vmatprep.subr.bf16.mxu0 %v879_v0 }
  0x68   :  { %677 = vmatmul.mubr.bf16.vlgmr.msra.gmra.mxu0 %v60_v18 }
  0x69   :  { %716 = vmatprep.mubr.msk.bf16.mxu0 %vm880_vm0, %v879_v0  ;;  %701 = vmatpush3.bf16.xpose.msra.mxu0 %v766_v20 }
  0x6a   :  { %702 = vmatprep.subr.bf16.mxu0 %v879_v0 }
  0x71   :  { %703 = vmatpush3.bf16.xpose.msra.mxu0 %v767_v21 }
  0x72   :  { %704 = vmatprep.subr.bf16.mxu0 %v879_v0 }
  0x79   :  { %705 = vmatpush3.bf16.xpose.msra.mxu0 %v768_v22 }
  0x7a   :  { %706 = vmatprep.subr.bf16.mxu0 %v879_v0 }
  0x81   :  { %707 = vmatpush3.bf16.xpose.msra.mxu0 %v769_v23 }
  0x82   :  { %708 = vmatprep.subr.bf16.mxu0 %v879_v0 }
  0x89   :  { %709 = vmatpush3.bf16.xpose.msra.mxu0 %v770_v24 }
  0x8a   :  { %710 = vmatprep.subr.bf16.mxu0 %v879_v0 }
  0x91   :  { %711 = vmatpush3.bf16.xpose.msra.mxu0 %v771_v25 }
  0x92   :  { %712 = vmatprep.subr.bf16.mxu0 %v879_v0 }
  0x99   :  { %713 = vmatpush3.bf16.xpose.msra.mxu0 %v772_v26 }
  0x9a   :  { %714 = vmatprep.subr.bf16.mxu0 %v879_v0  ;;  %v781_v0 = vld [vmem:[#allocation6 + $0xf8] sm:$0xff]  }
  0xa1   :  { %715 = vmatpush3.bf16.xpose.msra.mxu0 %v773_v36 }
  0xae   :  { %v559_v4 = vpop.permute.xlu0 %558 }
  0xaf   :  { %v564_v5 = vrot.slane %v559_v4, %v563_v3 }
 0x128   :  { %v166_v28 = vpop.f32.mrf.mxu0 }
 0x129   :  { %v167_v29 = vadd.f32 %v589_v27, %v166_v28 }
 0x12a   :  { %v678_v30 = vpop.f32.mrf.mxu0 }
 0x12b   :  { %v172_v31 = vmul.f32 0.01, %v167_v29 }
 0x12c   :  { %v169_v32 = vpop.f32.mrf.mxu0 }
 0x12d   :  { %v173_v33 = vmax.f32 %v167_v29, %v172_v31 }
 0x12e   :  { %v679_v34 = vpop.f32.mrf.mxu0 }
 0x12f   :  { %v174_v35 = vpack.c.bf16 %v173_v33, %v173_v33 }
 0x131   :  { %697 = vmatmul.mubr.bf16.vlgmr.msra.gmra.mxu1 %v174_v35 }
 0x132   :  { %722 = vmatprep.mubr.bf16.mxu1 %v774_v46 }
 0x1f1   :  { %v282_v38 = vpop.f32.mrf.mxu1 }
 0x1f2   :  { %v283_v39 = vadd.f32 %v598_v37, %v282_v38 }
 0x1f3   :  { %v698_v40 = vpop.f32.mrf.mxu1 }
 0x1f4   :  { %v288_v41 = vmul.f32 0.01, %v283_v39 }
 0x1f5   :  { %v285_v42 = vpop.f32.mrf.mxu1 }
 0x1f6   :  { %v289_v43 = vmax.f32 %v283_v39, %v288_v41 }
 0x1f7   :  { %v699_v44 = vpop.f32.mrf.mxu1 }
 0x1f8   :  { %v290_v45 = vpack.c.bf16 %v289_v43, %v289_v43 }
 0x1fa   :  { %717 = vmatmul.mubr.bf16.vlgmr.msra.gmra.mxu0 %v290_v45 }
 0x2ba   :  { %v398_v50 = vpop.f32.mrf.mxu0 }
 0x2bb   :  { %v399_v51 = vadd.f32 %v607_v49, %v398_v50 }
 0x2bc   :  { %v718_v52 = vpop.f32.mrf.mxu0 }
 0x2bd   :  { %v404_v53 = vmul.f32 0.01, %v399_v51 }
 0x2be   :  { %v401_v54 = vpop.f32.mrf.mxu0 }
 0x2bf   :  { %v405_v55 = vmax.f32 %v399_v51, %v404_v53 }
 0x2c0   :  { %v719_v56 = vpop.f32.mrf.mxu0 }
 0x2c1   :  { %v423_v57 = vpack.c.bf16 %v405_v55, %v405_v55 }
 0x2c3   :  { %720 = vmatprep.subr.bf16.mxu1 %v423_v57 }
 0x2c4   :  { %721 = vmatpush3.bf16.xpose.msra.mxu1 %v423_v57 }
 0x2cb   :  { %723 = vmatmul.mubr.bf16.vlgmr.msra.gmra.mxu1 %v775_v58 }
 0x2cc   :  { %726 = vmatprep.mubr.bf16.mxu1 %v776_v59 }
 0x2d3   :  { %727 = vmatmul.mubr.bf16.gmra.mxu1 %v777_v60 }
 0x2d4   :  { %730 = vmatprep.mubr.bf16.mxu1 %v778_v61 }
 0x2db   :  { %731 = vmatmul.mubr.bf16.gmra.mxu1 %v779_v62 }
 0x2dc   :  { %734 = vmatprep.mubr.bf16.mxu1 %v780_v63 }
 0x2e3   :  { %735 = vmatmul.mubr.bf16.gmra.mxu1 %v781_v0 }
 0x38b   :  { %v724_v6 = vpop.f32.mrf.mxu1 }
 0x38d   :  { %v506_v7 = vpop.f32.mrf.mxu1 }
 0x38e   :  { %v565_v8 = vadd.f32 %v564_v5, %v506_v7 }
 0x38f   :  { %v725_v9 = vpop.f32.mrf.mxu1 }
 0x390   :  { %v566_v10 = vsub.f32 0.0, %v565_v8 }
 0x391   :  { %v509_v11 = vpop.f32.mrf.mxu1 }
 0x392   :  { %v567_v12 = vmul.f32 1.442695, %v566_v10 }
 0x393   :  { %v728_v13 = vpop.f32.mrf.mxu1 }
 0x394   :  { %782 = vpow2.f32 %v567_v12 }
 0x395   :  { %v519_v14 = vpop.f32.mrf.mxu1 }
 0x397   :  { %v729_v15 = vpop.f32.mrf.mxu1 }
 0x399   :  { %v521_v16 = vpop.f32.mrf.mxu1 }
 0x39b   :  { %v732_v17 = vpop.f32.mrf.mxu1 }
 0x39d   :  { %v531_v18 = vpop.f32.mrf.mxu1 }
 0x39f   :  { %v733_v19 = vpop.f32.mrf.mxu1 }
 0x3a1   :  { %v783_v20 = vpop.eup %782  ;;  %v533_v21 = vpop.f32.mrf.mxu1 }
 0x3a2   :  { %v569_v22 = vadd.f32 1.0, %v783_v20 }
 0x3a3   :  { %v736_v23 = vpop.f32.mrf.mxu1 }
 0x3a4   :  { %784 = vrcp.f32 %v569_v22 }
 0x3a5   :  { %v543_v24 = vpop.f32.mrf.mxu1 }
 0x3a7   :  { %v737_v25 = vpop.f32.mrf.mxu1 }
 0x3a9   :  { %v545_v26 = vpop.f32.mrf.mxu1 }
 0x3b1   :  { %v785_v27 = vpop.eup %784 }
 0x3b2   :  { %572 = vst.msk [vmem:[#allocation9] sm:$0x1] %vm571_vm2, %v785_v27 }
 0x3b3   :  { %857 = shalt.err (!%p854_p5)
}
 0x3b4   :  { %582 = dma.vmem_to_hbm [thread:$0]  %s580_s2, 16, %s949_s3, [#allocation5]  }
 0x3b5   :  { %870 = dma.done.wait [#allocation5], 16  }
 0x3b6   :  { %871 = vsyncadd [#allocation5], 4294967280 }
 0x3b7   :  { %586 = vsyncpa [#allocation4], 1 }
 0x3b8   :  { %587 = vsyncpa [#allocation7], 1 }
 0x3b9   :  { %588 = vsyncpa [#allocation5], 1 }

</bundles_post_ra>
